<compile_context>
chip_gen: v6e
topology: v6e:2x2x1
jax: 0.10.0
libtpu: 0.0.40
codegen_flags: <defaults>
</compile_context>

<pallas_src>
import jax
import jax.numpy as jnp
from jax.experimental import pallas as pl
from jax.experimental.pallas import tpu as pltpu

EPS = 1e-7   # GENConv eps
# beta == 1.0 and not learnable in the default config -> folded away.


def genconv_kernel(off_ref, nblk_ref, x_ref, dst_ref, rhs_ref, w_ref, b_ref,
                   o_ref, acc_ref):
    i = pl.program_id(0)       # node-tile index ("parallel")
    e = pl.program_id(1)       # edge-block index within this node tile

    tn, dp = x_ref.shape
    te = rhs_ref.shape[0]

    @pl.when(e == 0)
    def _init():
        acc_ref[...] = jnp.zeros_like(acc_ref)

    # Only edge blocks that belong to this node tile contribute; the rest are
    # skipped (pure perf -- the mask would zero them anyway).
    @pl.when(e < nblk_ref[i])
    def _accumulate():
        # (tn, te) destination-incidence mask rebuilt in-kernel from the int32
        # dst ids; tile offset folded into the compare.  Padding uses dst=-1,
        # which never matches a row id >= 0.
        rel = dst_ref[...] - i * tn                                   # (1, te)
        rows = jax.lax.broadcasted_iota(jnp.int32, (tn, te), 0)       # (tn, te)
        mask = (rows == rel).astype(jnp.bfloat16)
        # fused segment sums: acc[:, :dp] += sum p, acc[:, dp:] += sum p*m
        acc_ref[...] += jnp.dot(mask, rhs_ref[...],
                                preferred_element_type=jnp.float32)

    @pl.when(e == pl.num_programs(1) - 1)
    def _finalize():
        acc = acc_ref[...]
        z = acc[:, :dp]
        s = acc[:, dp:]
        # aggregated message per node: sum_e a_e * m_e = s / z (0 if isolated)
        msg = jnp.where(z > 0.0, s * pl.reciprocal(z, approx=True), 0.0)
        feats = (x_ref[...] + msg).astype(jnp.bfloat16)
        # MLP with mlp_layers=1 == single Linear(in_dim, out_dim)
        o_ref[...] = (jnp.dot(feats, w_ref[...],
                              preferred_element_type=jnp.float32) + b_ref[...])


def _round_up(x, m):
    return (x + m - 1) // m * m


def genconv_forward(node_feats, src, dst, edge_emb, w, b, *, tn=512, te=1024):
    """GENConv forward.  Wrapper is eager (grid extent depends on the degree
    distribution, like MoE grouped-matmul kernels)."""
    N, D = node_feats.shape
    E = src.shape[0]
    Dout = w.shape[1]

    dp = _round_up(D, 128)               # lane-dense feature dim
    doutp = _round_up(Dout, 128)         # lane-dense output dim (unmasked vst)

    # >= 2 N tiles whenever possible so the "parallel" axis shards across the
    # two TensorCores on v7x; tn multiple of 8, te multiple of 128.
    tn = _round_up(min(tn, max(pl.cdiv(N, 2), 8)), 8)
    te = _round_up(min(te, _round_up(max(E, 1), 128)), 128)
    np_ = _round_up(N, tn)
    n_tiles = np_ // tn

    # ---- sort edges by destination & build per-N-tile edge-block ranges -----
    order = jnp.argsort(dst)
    dst_s = dst[order].astype(jnp.int32)
    src_s = src[order].astype(jnp.int32)
    eh_s = edge_emb[order]

    tile_of_edge = dst_s // tn                                        # (E,)
    counts = jnp.zeros((n_tiles,), jnp.int32).at[tile_of_edge].add(1)
    nblk = ((counts + te - 1) // te).astype(jnp.int32)                # blocks/tile
    off = jnp.concatenate([jnp.zeros((1,), jnp.int32),
                           jnp.cumsum(nblk)[:-1].astype(jnp.int32)])  # block offs
    max_blk = max(int(jnp.max(nblk)), 1)     # static grid extent (host value)
    total_blk = int(jnp.sum(nblk))
    # pad so off[i] + e (e < max_blk) never indexes past the edge buffer
    total_blk_padded = total_blk + max_blk
    ep = total_blk_padded * te

    # slot of each sorted edge inside the per-tile-padded edge buffer
    csum_counts = jnp.concatenate([jnp.zeros((1,), jnp.int32),
                                   jnp.cumsum(counts)[:-1].astype(jnp.int32)])
    rank_in_tile = jnp.arange(E, dtype=jnp.int32) - csum_counts[tile_of_edge]
    slot = off[tile_of_edge] * te + rank_in_tile                      # (E,)

    # ---- per-edge message + exact per-destination-shifted softmax (glue) ----
    # TODO(synk): fold this gather + elementwise pass into the kernel via a
    # scalar-prefetched src-id row gather so x_src never round-trips HBM.
    x_src = jnp.take(node_feats.astype(jnp.float32), src_s, axis=0)   # (E, D)
    m = jnp.maximum(x_src + eh_s.astype(jnp.float32), 0.0) + EPS      # (E, D)
    m_max = jnp.zeros((N, D), jnp.float32).at[dst_s].max(m)           # seg max
    p = jnp.exp(m - jnp.take(m_max, dst_s, axis=0))                   # (0, 1]

    def pad_feat(a):   # (E, D) -> (E, dp)
        return jnp.pad(a, ((0, 0), (0, dp - D)))

    rhs = jnp.concatenate([pad_feat(p), pad_feat(p * m)],
                          axis=-1).astype(jnp.bfloat16)               # (E, 2dp)
    rhs_p = jnp.zeros((ep, 2 * dp), jnp.bfloat16).at[slot].set(rhs)
    dst_p = jnp.full((ep,), -1, jnp.int32).at[slot].set(dst_s).reshape(1, ep)

    x_p = jnp.pad(node_feats.astype(jnp.float32),
                  ((0, np_ - N), (0, dp - D)))
    w_p = jnp.pad(w.astype(jnp.bfloat16), ((0, dp - D), (0, doutp - Dout)))
    b_p = jnp.pad(b.astype(jnp.float32), (0, doutp - Dout)).reshape(1, doutp)

    cost = pl.CostEstimate(
        flops=2 * total_blk * te * tn * (2 * dp) + 2 * np_ * dp * doutp,
        transcendentals=0,
        bytes_accessed=(ep * (2 * dp) * 2 + ep * 4        # rhs + dst streams
                        + np_ * dp * 4 + np_ * doutp * 4  # x + out
                        + dp * doutp * 2))

    grid = (n_tiles, max_blk)
    out = pl.pallas_call(
        genconv_kernel,
        out_shape=jax.ShapeDtypeStruct((np_, doutp), jnp.float32),
        grid_spec=pltpu.PrefetchScalarGridSpec(
            num_scalar_prefetch=2,           # off, nblk (SMEM)
            grid=grid,
            in_specs=[
                pl.BlockSpec((tn, dp), lambda i, e, off, nblk: (i, 0)),       # x
                pl.BlockSpec((1, te),
                             lambda i, e, off, nblk: (0, off[i] + e)),        # dst ids
                pl.BlockSpec((te, 2 * dp),
                             lambda i, e, off, nblk: (off[i] + e, 0)),        # [p | p*m]
                pl.BlockSpec((dp, doutp), lambda i, e, off, nblk: (0, 0)),    # W
                pl.BlockSpec((1, doutp), lambda i, e, off, nblk: (0, 0)),     # bias
            ],
            out_specs=pl.BlockSpec((tn, doutp), lambda i, e, off, nblk: (i, 0)),
            scratch_shapes=[pltpu.VMEM((tn, 2 * dp), jnp.float32)],
        ),
        compiler_params=pltpu.CompilerParams(
            dimension_semantics=("parallel", "arbitrary"),
            vmem_limit_bytes=48 * 1024 * 1024,   # tiles are a few MiB; fits
                                                 # v7x 64 MiB with headroom
        ),
        cost_estimate=cost,
    )(off, nblk, x_p, dst_p, rhs_p, w_p, b_p)
    return out[:N, :Dout]


def bond_encoder(edge_feats, emb_tables):
    """OGB-style BondEncoder: sum of per-feature embedding lookups (glue gather)."""
    h = jnp.zeros((edge_feats.shape[0], emb_tables[0].shape[1]), jnp.float32)
    for i, tbl in enumerate(emb_tables):
        h = h + jnp.take(tbl, edge_feats[:, i], axis=0)
    return h


if __name__ == "__main__":
    key = jax.random.PRNGKey(0)
    N, E = 40, 384
    IN_DIM, OUT_DIM = 128, 128      # lane-dense feature dims

    k = jax.random.split(key, 8)
    node_feats = jax.random.normal(k[0], (N, IN_DIM), jnp.float32)
    src = jax.random.randint(k[1], (E,), 0, N, jnp.int32)
    dst = jax.random.randint(k[2], (E,), 0, N, jnp.int32)

    # BondEncoder: categorical edge features with OGB bond vocab sizes [5, 6, 2]
    bond_vocab = [5, 6, 2]
    edge_cat = jnp.stack(
        [jax.random.randint(k[3 + i], (E,), 0, v, jnp.int32)
         for i, v in enumerate(bond_vocab)], axis=1)                    # (E, 3)
    emb_tables = [
        0.1 * jax.random.normal(jax.random.fold_in(k[6], i), (v, IN_DIM), jnp.float32)
        for i, v in enumerate(bond_vocab)
    ]

    # MLP (mlp_layers=1) parameters: Linear(IN_DIM, OUT_DIM)
    w = jax.random.normal(k[7], (IN_DIM, OUT_DIM), jnp.float32) / jnp.sqrt(IN_DIM)
    b = 0.01 * jnp.ones((OUT_DIM,), jnp.float32)

    edge_emb = bond_encoder(edge_cat, emb_tables)                       # (E, IN_DIM)

    # small tiles so the demo exercises multi-tile accumulation on both axes
    out = genconv_forward(node_feats, src, dst, edge_emb, w, b, tn=16, te=128)
    out = jax.block_until_ready(out)

    # pure-JAX f32 reference (scatter-add edge softmax), for sanity
    x_src = jnp.take(node_feats, src, axis=0)
    m = jnp.maximum(x_src + edge_emb, 0.0) + EPS
    expm = jnp.exp(m)                                   # beta == 1.0
    z = jnp.zeros((N, IN_DIM), jnp.float32).at[dst].add(expm)
    a = expm / jnp.take(z, dst, axis=0)
    msg = jnp.zeros((N, IN_DIM), jnp.float32).at[dst].add(a * m)
    ref = (node_feats + msg) @ w + b

    assert out.shape == (N, OUT_DIM)
    max_err = float(jnp.max(jnp.abs(out - ref)))
    assert jnp.allclose(out, ref, atol=1.5e-1, rtol=5e-2), (
        f"mismatch vs reference (bf16 MXU operands, f32 accum): max abs err {max_err}")
    print("KERNEL_OK")
</pallas_src>

<mosaic_0001>
module attributes {stable_mosaic.version = 11 : i64} {
  func.func @genconv_kernel(%arg0: i32, %arg1: i32, %arg2: memref<3xi32, #tpu.memory_space<smem>>, %arg3: memref<3xi32, #tpu.memory_space<smem>>, %arg4: memref<16x128xf32, #tpu.memory_space<vmem>>, %arg5: memref<1x128xi32, #tpu.memory_space<vmem>>, %arg6: memref<128x256xbf16, #tpu.memory_space<vmem>>, %arg7: memref<128x128xbf16, #tpu.memory_space<vmem>>, %arg8: memref<1x128xf32, #tpu.memory_space<vmem>>, %arg9: memref<16x128xf32, #tpu.memory_space<vmem>>, %arg10: memref<16x256xf32, #tpu.memory_space<vmem>>) attributes {dimension_semantics = [#tpu.dimension_semantics<parallel>, #tpu.dimension_semantics<arbitrary>], iteration_bounds = array<i64: 3, 2>, scalar_prefetch = 2 : i64, scratch_operands = 1 : i64, tpu.core_type = #tpu.core_type<tc>, window_params = [{transform_indices = @transform_0, window_bounds = array<i64: 16, 128>}, {transform_indices = @transform_1, window_bounds = array<i64: 1, 128>}, {transform_indices = @transform_2, window_bounds = array<i64: 128, 256>}, {pipeline_mode = #tpu.pipeline_mode<synchronous>, transform_indices = @transform_3, window_bounds = array<i64: 128, 128>}, {pipeline_mode = #tpu.pipeline_mode<synchronous>, transform_indices = @transform_4, window_bounds = array<i64: 1, 128>}, {transform_indices = @transform_5, window_bounds = array<i64: 16, 128>}]} {
    %c0_i32 = arith.constant 0 : i32
    %0 = arith.cmpi eq, %arg1, %c0_i32 : i32
    %1 = arith.extui %0 : i1 to i32
    %c0_i32_0 = arith.constant 0 : i32
    %2 = arith.cmpi ne, %1, %c0_i32_0 : i32
    scf.if %2 {
      %cst = arith.constant 0.000000e+00 : f32
      %11 = vector.broadcast %cst : f32 to vector<16x256xf32>
      %c0 = arith.constant 0 : index
      %c0_3 = arith.constant 0 : index
      %12 = vector.load %arg10[%c0, %c0_3] : memref<16x256xf32, #tpu.memory_space<vmem>>, vector<16x256xf32>
      tpu.vector_store %arg10[%c0, %c0_3], %11 {strides = array<i32>} : memref<16x256xf32, #tpu.memory_space<vmem>>, vector<16x256xf32>,
    } else {
    }
    %3 = arith.index_cast %arg0 : i32 to index
    %4 = memref.load %arg3[%3] : memref<3xi32, #tpu.memory_space<smem>>
    %5 = arith.cmpi slt, %arg1, %4 : i32
    %6 = arith.extui %5 : i1 to i32
    %c0_i32_1 = arith.constant 0 : i32
    %7 = arith.cmpi ne, %6, %c0_i32_1 : i32
    scf.if %7 {
      %c0 = arith.constant 0 : index
      %c0_3 = arith.constant 0 : index
      %11 = vector.load %arg5[%c0, %c0_3] : memref<1x128xi32, #tpu.memory_space<vmem>>, vector<1x128xi32>
      %c16_i32 = arith.constant 16 : i32
      %12 = arith.muli %arg0, %c16_i32 : i32
      %13 = vector.broadcast %12 : i32 to vector<1x128xi32>
      %14 = arith.subi %11, %13 : vector<1x128xi32>
      %15 = tpu.iota {dimensions = array<i32: 0>} : vector<16x128xi32>
      %16 = vector.broadcast %14 : vector<1x128xi32> to vector<16x128xi32>
      %17 = arith.cmpi eq, %15, %16 : vector<16x128xi32>
      %18 = arith.extui %17 : vector<16x128xi1> to vector<16x128xi32>
      %19 = arith.sitofp %18 : vector<16x128xi32> to vector<16x128xf32>
      %20 = arith.truncf %19 : vector<16x128xf32> to vector<16x128xbf16>
      %c0_4 = arith.constant 0 : index
      %c0_5 = arith.constant 0 : index
      %21 = vector.load %arg10[%c0_4, %c0_5] : memref<16x256xf32, #tpu.memory_space<vmem>>, vector<16x256xf32>
      %c0_6 = arith.constant 0 : index
      %c0_7 = arith.constant 0 : index
      %22 = vector.load %arg6[%c0_6, %c0_7] : memref<128x256xbf16, #tpu.memory_space<vmem>>, vector<128x256xbf16>
      %cst = arith.constant dense<0.000000e+00> : vector<16x256xf32>
      %23 = tpu.matmul %20, %22, %cst {dimension_numbers = #tpu.dot_dimension_numbers<[1], [0], [0], [1], [0, 0, 1, 1], [], []>} : vector<16x128xbf16>, vector<128x256xbf16>, vector<16x256xf32> -> vector<16x256xf32>
      %24 = arith.addf %21, %23 : vector<16x256xf32>
      %c0_8 = arith.constant 0 : index
      %c0_9 = arith.constant 0 : index
      %25 = vector.load %arg10[%c0_8, %c0_9] : memref<16x256xf32, #tpu.memory_space<vmem>>, vector<16x256xf32>
      tpu.vector_store %arg10[%c0_8, %c0_9], %24 {strides = array<i32>} : memref<16x256xf32, #tpu.memory_space<vmem>>, vector<16x256xf32>,
    } else {
    }
    %c1_i32 = arith.constant 1 : i32
    %8 = arith.cmpi eq, %arg1, %c1_i32 : i32
    %9 = arith.extui %8 : i1 to i32
    %c0_i32_2 = arith.constant 0 : i32
    %10 = arith.cmpi ne, %9, %c0_i32_2 : i32
    scf.if %10 {
      %c0 = arith.constant 0 : index
      %c0_3 = arith.constant 0 : index
      %11 = vector.load %arg10[%c0, %c0_3] : memref<16x256xf32, #tpu.memory_space<vmem>>, vector<16x256xf32>
      %12 = vector.extract_strided_slice %11 {offsets = [0, 0], sizes = [16, 128], strides = [1, 1]} : vector<16x256xf32> to vector<16x128xf32>
      %13 = vector.extract_strided_slice %11 {offsets = [0, 128], sizes = [16, 128], strides = [1, 1]} : vector<16x256xf32> to vector<16x128xf32>
      %cst = arith.constant 0.000000e+00 : f32
      %14 = vector.broadcast %cst : f32 to vector<16x128xf32>
      %15 = arith.cmpf ogt, %12, %14 : vector<16x128xf32>
      %16 = tpu.reciprocal %12 {approx = true} : vector<16x128xf32> -> vector<16x128xf32>
      %17 = arith.mulf %13, %16 : vector<16x128xf32>
      %cst_4 = arith.constant 0.000000e+00 : f32
      %18 = vector.broadcast %cst_4 : f32 to vector<16x128xf32>
      %19 = arith.select %15, %17, %18 : vector<16x128xi1>, vector<16x128xf32>
      %c0_5 = arith.constant 0 : index
      %c0_6 = arith.constant 0 : index
      %20 = vector.load %arg4[%c0_5, %c0_6] : memref<16x128xf32, #tpu.memory_space<vmem>>, vector<16x128xf32>
      %21 = arith.addf %20, %19 : vector<16x128xf32>
      %22 = arith.truncf %21 : vector<16x128xf32> to vector<16x128xbf16>
      %c0_7 = arith.constant 0 : index
      %c0_8 = arith.constant 0 : index
      %23 = vector.load %arg7[%c0_7, %c0_8] : memref<128x128xbf16, #tpu.memory_space<vmem>>, vector<128x128xbf16>
      %cst_9 = arith.constant dense<0.000000e+00> : vector<16x128xf32>
      %24 = tpu.matmul %22, %23, %cst_9 {dimension_numbers = #tpu.dot_dimension_numbers<[1], [0], [0], [1], [0, 0, 1, 1], [], []>} : vector<16x128xbf16>, vector<128x128xbf16>, vector<16x128xf32> -> vector<16x128xf32>
      %c0_10 = arith.constant 0 : index
      %c0_11 = arith.constant 0 : index
      %25 = vector.load %arg8[%c0_10, %c0_11] : memref<1x128xf32, #tpu.memory_space<vmem>>, vector<1x128xf32>
      %26 = vector.broadcast %25 : vector<1x128xf32> to vector<16x128xf32>
      %27 = arith.addf %24, %26 : vector<16x128xf32>
      %c0_12 = arith.constant 0 : index
      %c0_13 = arith.constant 0 : index
      %28 = vector.load %arg9[%c0_12, %c0_13] : memref<16x128xf32, #tpu.memory_space<vmem>>, vector<16x128xf32>
      tpu.vector_store %arg9[%c0_12, %c0_13], %27 {strides = array<i32>} : memref<16x128xf32, #tpu.memory_space<vmem>>, vector<16x128xf32>,
    } else {
    }
    return
  }
  func.func @transform_0(%arg0: i32, %arg1: i32, %arg2: memref<3xi32, #tpu.memory_space<smem>>, %arg3: memref<3xi32, #tpu.memory_space<smem>>) -> (i32, i32) {
    %c0_i32 = arith.constant 0 : i32
    %c0_i32_0 = arith.constant 0 : i32
    return %arg0, %c0_i32 : i32, i32
  }
  func.func @transform_1(%arg0: i32, %arg1: i32, %arg2: memref<3xi32, #tpu.memory_space<smem>>, %arg3: memref<3xi32, #tpu.memory_space<smem>>) -> (i32, i32) {
    %0 = arith.index_cast %arg0 : i32 to index
    %1 = memref.load %arg2[%0] : memref<3xi32, #tpu.memory_space<smem>>
    %2 = arith.addi %1, %arg1 : i32
    %c0_i32 = arith.constant 0 : i32
    %c0_i32_0 = arith.constant 0 : i32
    return %c0_i32, %2 : i32, i32
  }
  func.func @transform_2(%arg0: i32, %arg1: i32, %arg2: memref<3xi32, #tpu.memory_space<smem>>, %arg3: memref<3xi32, #tpu.memory_space<smem>>) -> (i32, i32) {
    %0 = arith.index_cast %arg0 : i32 to index
    %1 = memref.load %arg2[%0] : memref<3xi32, #tpu.memory_space<smem>>
    %2 = arith.addi %1, %arg1 : i32
    %c0_i32 = arith.constant 0 : i32
    %c0_i32_0 = arith.constant 0 : i32
    return %2, %c0_i32 : i32, i32
  }
  func.func @transform_3(%arg0: i32, %arg1: i32, %arg2: memref<3xi32, #tpu.memory_space<smem>>, %arg3: memref<3xi32, #tpu.memory_space<smem>>) -> (i32, i32) {
    %c0_i32 = arith.constant 0 : i32
    %c0_i32_0 = arith.constant 0 : i32
    %c0_i32_1 = arith.constant 0 : i32
    return %c0_i32, %c0_i32_0 : i32, i32
  }
  func.func @transform_4(%arg0: i32, %arg1: i32, %arg2: memref<3xi32, #tpu.memory_space<smem>>, %arg3: memref<3xi32, #tpu.memory_space<smem>>) -> (i32, i32) {
    %c0_i32 = arith.constant 0 : i32
    %c0_i32_0 = arith.constant 0 : i32
    %c0_i32_1 = arith.constant 0 : i32
    return %c0_i32, %c0_i32_0 : i32, i32
  }
  func.func @transform_5(%arg0: i32, %arg1: i32, %arg2: memref<3xi32, #tpu.memory_space<smem>>, %arg3: memref<3xi32, #tpu.memory_space<smem>>) -> (i32, i32) {
    %c0_i32 = arith.constant 0 : i32
    %c0_i32_0 = arith.constant 0 : i32
    return %arg0, %c0_i32 : i32, i32
  }
}

</mosaic_0001>

<bundles_post_ra>
// kernel: tpu_custom_call.1
= control target key start
LH: loop header
LB: loop body
LE: loop exit
PB: predicated region body
PF: predicated region fallthrough
CT: control target
= control target key end

     0   :  { %s1422_s24 = smov [#allocation4]   ;;  %s1921_s0 = inlined_call_operand.hbm [shape: s32[3], index: 0, kind: input, shape index: {}]   ;;  %s1922_s2 = inlined_call_operand.hbm [shape: f32[48,128], index: 2, kind: input, shape index: {}]   ;;  %s1923_s3 = inlined_call_operand.hbm [shape: s32[1,896], index: 3, kind: input, shape index: {}]   ;;  %s1924_s4 = inlined_call_operand.hbm [shape: bf16[896,256], index: 4, kind: input, shape index: {}]   ;;  %s1925_s5 = inlined_call_operand.hbm [shape: bf16[128,128], index: 5, kind: input, shape index: {}]   ;;  %s1926_s6 = inlined_call_operand.vmem [shape: f32[1,128], index: 6, kind: input, shape index: {}]   ;;  %s1927_s7 = inlined_call_operand.hbm [shape: f32[48,128], index: 7, kind: output, shape index: {}]   ;;  %s1928_s1 = inlined_call_operand.vmem [shape: s32[3], index: 1, kind: input, shape index: {}]  }
   0x1   :  { %1947 = sst [smem:[#allocation35_spill]] %s1922_s2  ;;  %s14_s29 = sshll.u32 %s1928_s1, 4  ;;  %s15_s29 = int_to_ptr.vmem [resolvable:$true] %s14_s29 }
   0x2   :  { %1948 = sst [smem:[#allocation36_spill]] %s1923_s3  ;;  %s1140_s30 = scalar_lea.vmem %s15_s29, 16 }
   0x3   :  { %1949 = sst [smem:[#allocation37_spill]] %s1924_s4  ;;  %p1141_p0 = scmp.ne.s32.totalorder %s15_s29, %s1140_s30 }
   0x4   :  { %1950 = sst [smem:[#allocation38_spill]] %s1925_s5  ;;  %p1145_p1 = scmp.lt.s32.totalorder %s15_s29, %s15_s29 }
   0x5   :  { %1951 = sst [smem:[#allocation39_spill]] %s1926_s6  ;;  %p1146_p2 = scmp.lt.s32.totalorder %s1140_s30, %s1140_s30 }
   0x6   :  { %1952 = sst [smem:[#allocation40_spill]] %s1927_s7 }
   0x7   :  { %13 = dma.hbm_to_smem %s1921_s0, 16, %s1422_s24, [#allocation3] }
   0x8   :  { %p1147_p3 = por %p1146_p2, %p1145_p1 }
   0xa   :  { %p1148_p4 = pnand %p1147_p3, %p1141_p0 }
   0xc   :  { %1151 = shalt.err (!%p1148_p4)  }
   0xd   :  { %s1423_s8 = smov [#allocation5]  }
   0xe   :  { %17 = dma.vmem_to_smem %s15_s29, 16, %s1423_s8, [#allocation3] }
   0xf   :  { %1344 = dma.done.wait [#allocation3], 32 }
  0x10   :  { %1345 = vsyncadd [#allocation3], 4294967264 }
  0x11   :  { %19 = sfence }
  0x12   :  { %20 = vsyncpa [#allocation7], 0 }
  0x13   :  { %22 = vsyncpa [#allocation7 + $0x1], 0 }
  0x14   :  { %23 = vsyncpa [#allocation10], 0 }
  0x15   :  { %25 = vsyncpa [#allocation10 + $0x1], 0 }
  0x16   :  { %26 = vsyncpa [#allocation13], 0 }
  0x17   :  { %27 = vsyncpa [#allocation8], 0 }
  0x18   :  { %29 = vsyncpa [#allocation8 + $0x1], 0  ;;  %s1486_s0 = smov 0   ;;  %s1488_s1 = smov 0  }
  0x19   :  { %s1490_s9 = smov 0   ;;  %s1492_s10 = smov 0  }
  0x1a   :  { %s1494_s11 = smov 0   ;;  %s1496_s12 = smov 0  }
  0x1b   :  { %s1498_s13 = smov 0   ;;  %s1500_s14 = smov 0  }
  0x1c   :  { %s1502_s15 = smov 0   ;;  %s1504_s16 = smov 0  }
  0x1d   :  { %s1506_s17 = smov 0   ;;  %s1508_s18 = smov 0  }
  0x1e   :  { %s1510_s19 = smov 0   ;;  %s1512_s20 = smov 0  }
  0x1f LB: > { %1953 = sst [smem:[#allocation25_spill]] %s1368_s0  ;;  %s44_s21 = sadd.s32 1, %s1412_s18  ;;  %s1420_s20 = sphi %s1512_s20, %s35_s20   ;;  %s1416_s19 = sphi %s1510_s19, %s2021_s19   ;;  %s1412_s18 = sphi %s1508_s18, %s2030_s18   ;;  %s1408_s17 = sphi %s1506_s17, %s2019_s17   ;;  %s1404_s16 = sphi %s1504_s16, %s2029_s16   ;;  %s1400_s15 = sphi %s1502_s15, %s2028_s15   ;;  %s1396_s14 = sphi %s1500_s14, %s2027_s14   ;;  %s1392_s13 = sphi %s1498_s13, %s2026_s13   ;;  %s1388_s12 = sphi %s1496_s12, %s2025_s12   ;;  %s1384_s11 = sphi %s1494_s11, %s2024_s11   ;;  %s1380_s10 = sphi %s1492_s10, %s2023_s10   ;;  %s1376_s9 = sphi %s1490_s9, %s2022_s9   ;;  %s1372_s1 = sphi %s1488_s1, %s2016_s1   ;;  %s1368_s0 = sphi %s1486_s0, %s2015_s0  }
  0x20   : > { %1954 = sst [smem:[#allocation26_spill]] %s1372_s1  ;;  %s47_s22 = sadd.s32 1, %s1416_s19 }
  0x21   : > { %1955 = sst [smem:[#allocation27_spill]] %s1376_s9  ;;  %p45_p5 = scmp.ge.s32.totalorder %s44_s21, 2 }
  0x22   : > { %1956 = sst [smem:[#allocation28_spill]] %s1404_s16  ;;  %p1935_p6 = scmp.eq.s32.totalorder %s1420_s20, 0 }
  0x23   : > { %1957 = sst [smem:[#allocation29_spill]] %s1408_s17  ;;  %s84_s24 = sadd.s32 1, %s1388_s12 }
  0x24   : > { %1958 = sst [smem:[#allocation30_spill]] %s1416_s19  ;;  %s2032_s21 = smov (%p45_p5, %s44_s21), 0 }
  0x25   : > { %s77_s23 = sld [smem:[#allocation4 + %s1416_s19]]  ;;  %s2034_s22 = smov (!%p45_p5, %s47_s22), %s1416_s19 }
  0x26   : > { %1959 = sst [smem:[#allocation31_spill]] %s2032_s21  ;;  %p91_p7 = scmp.ne.s32.totalorder %s1388_s12, %s1384_s11 }
  0x27   : > { %p97_p8 = scmp.ne.s32.totalorder %s1384_s11, %s1380_s10  ;;  %p49_p9 = scmp.ge.s32.totalorder %s2034_s22, 3 }
  0x28   : > { %s107_s25 = sld [smem:[#allocation4 + %s1416_s19]]  ;;  %p1571_p10 = por %p91_p7, %p1935_p6 }
  0x29   : > { %s2036_s22 = smov (%p49_p9, %s2034_s22), 0  ;;  %p1934_p11 = scmp.lt.s32.totalorder %s1420_s20, 6 }
  0x2a   : > { %1961 = sst [smem:[#allocation32_spill]] %s2036_s22  ;;  %s258_s7 = sand.u32 1, %s1388_s12  }
  0x2b   : > { %s78_s27 = sadd.s32 %s1412_s18, %s77_s23  ;;  %s79_s28 = sld [smem:[#allocation4 + %s2036_s22]] }
  0x2c   : > { %s109_s30 = sld [smem:[#allocation4 + %s2036_s22]]  ;;  %p1588_p12 = pnand %p1934_p11, %p1571_p10 }
  0x2d   : > { %s931_s17 = scalar_select %p1571_p10, [#allocation4], [#allocation15] }
  0x2e   : > { %s108_s8 = sadd.s32 %s1412_s18, %s107_s25  ;;  %s259_s29 = scalar_lea.vmem [#allocation9], %s258_s7 }
  0x2f   : > { %s932_s23 = scalar_select %p1571_p10, %s1416_s19, 0 }
  0x30   : > { %s268_s4 = sshll.u32 %s259_s29, 4  ;;  %s2038_s17 = smov (!%p1934_p11, %s931_s17), [#allocation17]  ;;  %s1602_s4 = int_to_ptr.vmem [resolvable:$true] %s268_s4 }
  0x31   : > { %s80_s16 = sadd.s32 %s79_s28, %s2032_s21  ;;  %s2040_s23 = smov (!%p1934_p11, %s932_s23), 0 }
  0x32   : > { %s81_s25 = ssub.s32 %s78_s27, %s80_s16  ;;  %s110_s0 = sadd.s32 %s109_s30, %s2032_s21 }
  0x33   : > { %p82_p13 = scmp.eq.s32.totalorder %s81_s25, 0  ;;  %s1599_s1 = ssub.s32 %s108_s8, %s110_s0 }
  0x34   : > { %s260_s7 = sld [smem:[%s2038_s17 + %s2040_s23]]  ;;  %s1612_s26 = sadd.s32 4294967295, %s1420_s20  }
  0x35   : > { %s1605_s9 = scalar_select %p82_p13, %s1388_s12, %s84_s24  }
  0x36   : > { %p841_p1 = scmp.ge.s32.totalorder %s1420_s20, 1  ;;  %p1936_p2 = scmp.eq.s32.totalorder %s1612_s26, 0 }
  0x37   : > { %1963 = sst [smem:[#allocation33_spill]] %s1605_s9  ;;  %p206_p4 = scmp.lt.s32.totalorder %s1420_s20, 7 }
  0x38   : > { %p1623_p5 = por %p97_p8, %p1936_p2  ;;  %s1424_s27 = smov [#allocation12]  }
  0x39   : > { %p1628_p7 = pnand %p841_p1, %p206_p4  ;;  %s1632_s28 = sshll.u32 %s1424_s27, 4  ;;  %s219_s28 = int_to_ptr.vmem [resolvable:$true] %s1632_s28 }
  0x3a   : > { %s1964_s0 = scalar_select %p1623_p5, 1, 0 }
  0x3b   : > { %s261_s16 = sadd.s32 %s1412_s18, %s260_s7  ;;  %s1966_s3 = sld [smem:[#allocation36_spill]] }
  0x3c   : > { %s1965_s24 = scalar_select %p1628_p7, 1, 0 }
  0x3d   : > { %s847_s17 = sshll.u32 %s261_s16, 4  ;;  %s1967_s10 = sand.u32 1, %s1420_s20  }
  0x3e   : > { %s1641_s23 = scalar_lea.sflag [#allocation10], %s1967_s10  ;;  %p1154_p10 = pneg %p1588_p12 }
  0x41   : > { %s266_s8 = scalar_lea.hbm %s1966_s3, %s847_s17  ;;  %s1157_s27 = scalar_lea.hbm %s1966_s3, 112 }
  0x42   : > { %s1152_s25 = scalar_lea.hbm %s266_s8, 16  ;;  %p1158_p4 = scmp.lt.s32.totalorder %s266_s8, %s1966_s3 }
  0x43   : > { %p1153_p8 = scmp.ne.s32.totalorder %s266_s8, %s1152_s25  ;;  %p1159_p0 = scmp.lt.s32.totalorder %s1157_s27, %s1152_s25 }
  0x45   : > { %p1155_p13 = pnand %p1154_p10, %p1153_p8  ;;  %p1160_p11 = por %p1159_p0, %p1158_p4 }
  0x47   : > { %p1156_p1 = pneg %p1155_p13 }
  0x49   : > { %p1161_p3 = pnand %p1160_p11, %p1156_p1 }
  0x4b   : > { %1164 = shalt.err (!%p1161_p3)
}
  0x4c   : > { %s1165_s17 = scalar_lea.vmem %s1602_s4, 16  ;;  %s1425_s29 = smov [#allocation9]  }
  0x4d   : > { %p1166_p6 = scmp.ne.s32.totalorder %s1602_s4, %s1165_s17  ;;  %s1170_s30 = sshll.u32 %s1425_s29, 4  ;;  %s1171_s30 = int_to_ptr.vmem [resolvable:$false] %s1170_s30 }
  0x4e   : > { %s1172_s10 = scalar_lea.vmem %s1171_s30, 32  ;;  %p1173_p13 = scmp.lt.s32.totalorder %s1602_s4, %s1171_s30 }
  0x4f   : > { %p1168_p9 = pnand %p1166_p6, %p1154_p10  ;;  %p1174_p2 = scmp.lt.s32.totalorder %s1172_s10, %s1165_s17 }
  0x51   : > { %p1169_p8 = pneg %p1168_p9  ;;  %p1175_p5 = por %p1174_p2, %p1173_p13 }
  0x53   : > { %p1176_p7 = pnand %p1175_p5, %p1169_p8 }
  0x55   : > { %1179 = shalt.err (!%p1176_p7)
}
  0x56   : > { %956 = dma.hbm_to_vmem [thread:$0]  (!%p1588_p12), %s266_s8, 16, %s1602_s4, %s1641_s23  }
  0x57   : > { %p1968_p6 = scmp.eq.s32.totalorder %s1612_s26, 0  ;;  %p1969_p11 = scmp.ne.s32.totalorder %s1965_s24, 0 }
  0x58   : > { %s1191_s9 = scalar_lea.vmem %s219_s28, 1024  ;;  %p1199_p5 = scmp.lt.s32.totalorder %s219_s28, %s219_s28 }
  0x59   : > { %p1970_p0 = pneg %p1969_p11  ;;  %p1192_p10 = scmp.ne.s32.totalorder %s219_s28, %s1191_s9 }
  0x5a   : > { %p1200_p7 = scmp.lt.s32.totalorder %s1191_s9, %s1191_s9 }
  0x5b   : > { %p945_p3 = pnand %p1970_p0, %p1968_p6 }
  0x5c   : > { %p1201_p4 = por %p1200_p7, %p1199_p5 }
  0x5d   : > { %p1182_p9 = pneg %p945_p3 }
  0x5f   : > { %p1194_p1 = pnand %p1192_p10, %p1182_p9 }
  0x61   : > { %p1195_p2 = pneg %p1194_p1 }
  0x63   : > { %p1202_p8 = pnand %p1201_p4, %p1195_p2 }
  0x65   : > { %1205 = shalt.err (!%p1202_p8)
}
  0x66   : > { %s1426_s6 = smov 64   ;;  %s1427_s4 = smov 4  }
  0x67   : > { %s1971_s5 = sld [smem:[#allocation38_spill]]  ;;  %s840_s25 = sadd.s32 4294967294, %s1420_s20  }
  0x68   : > { %s51_s7 = ssub.s32 %s1416_s19, %s2036_s22  ;;  %s54_s16 = sadd.s32 1, %s1400_s15 }
  0x69   : > { %p52_p12 = scmp.eq.s32.totalorder %s51_s7, 0  ;;  %p61_p13 = scmp.ne.s32.totalorder %s1400_s15, %s1396_s14 }
  0x6a   : > { %p67_p6 = scmp.ne.s32.totalorder %s1396_s14, %s1392_s13  ;;  %p199_p0 = scmp.eq.s32.totalorder %s840_s25, 5 }
  0x6b   : > { %s1676_s27 = scalar_select %p52_p12, %s1400_s15, %s54_s16  }
  0x6c   : > { %p1973_p9 = scmp.eq.s32.totalorder %s1420_s20, 0  ;;  %p1974_p1 = scmp.eq.s32.totalorder %s1612_s26, 0 }
  0x6d   : > { %947 = dma.hbm_to_vmem [thread:$0]  (!%p945_p3), %s1971_s5, 1024, %s219_s28, [#allocation13], %s1426_s6, %s1426_s6, %s1427_s4  }
  0x6e   : > { %1972 = sst [smem:[#allocation34_spill]] %s1676_s27  ;;  %p63_p10 = por %p1973_p9, %p61_p13 }
  0x6f   : > { %p1682_p2 = por %p1974_p1, %p67_p6  ;;  %p1976_p5 = scmp.eq.s32.totalorder %s1612_s26, 5 }
  0x70   : > { %p1692_p3 = por %p199_p0, %p67_p6  ;;  %s235_s30 = sand.u32 1, %s1400_s15  }
  0x71   : > { %s1975_s17 = scalar_select %p1682_p2, 1, 0 }
  0x72   : > { %p1688_p7 = por %p1976_p5, %p61_p13  ;;  %s895_s10 = sshll.u32 %s1416_s19, 8 }
  0x73   : > { %s1978_s29 = scalar_select %p1692_p3, 1, 0 }
  0x74   : > { %s1977_s28 = scalar_select %p1688_p7, 1, 0 }
  0x75   : > { %s844_s9 = sshll.u32 %s235_s30, 4  ;;  %s1979_s2 = sld [smem:[#allocation35_spill]] }
  0x76   : > { %s239_s8 = scalar_lea.vmem [#allocation6], %s844_s9  ;;  %p1980_p4 = scmp.lt.s32.totalorder %s1420_s20, 6 }
  0x77   : > { %s246_s25 = sshll.u32 %s239_s8, 4  ;;  %s236_s16 = scalar_lea.sflag [#allocation7], %s235_s30  ;;  %s247_s25 = int_to_ptr.vmem [resolvable:$true] %s246_s25 }
  0x78   : > { %p1703_p8 = pnand %p1980_p4, %p63_p10  ;;  %s1219_s3 = scalar_lea.vmem %s247_s25, 256 }
  0x79   : > { %p1220_p13 = scmp.ne.s32.totalorder %s247_s25, %s1219_s3  ;;  %s1428_s5 = smov [#allocation6]  }
  0x7a   : > { %p1208_p12 = pneg %p1703_p8  ;;  %s1224_s22 = sshll.u32 %s1428_s5, 4  ;;  %s1225_s22 = int_to_ptr.vmem [resolvable:$false] %s1224_s22 }
  0x7b   : > { %s245_s21 = scalar_lea.hbm %s1979_s2, %s895_s10  ;;  %s1226_s10 = scalar_lea.vmem %s1225_s22, 512 }
  0x7c   : > { %p1222_p6 = pnand %p1220_p13, %p1208_p12  ;;  %p1227_p9 = scmp.lt.s32.totalorder %s247_s25, %s1225_s22 }
  0x7d   : > { %p1228_p1 = scmp.lt.s32.totalorder %s1226_s10, %s1219_s3 }
  0x7e   : > { %p1223_p0 = pneg %p1222_p6 }
  0x7f   : > { %p1229_p5 = por %p1228_p1, %p1227_p9 }
  0x81   : > { %p1230_p10 = pnand %p1229_p5, %p1223_p0 }
  0x83   : > { %1233 = shalt.err (!%p1230_p10)
}
  0x84   : > { %s1941_s9 = smov 128   ;;  %s1982_s6 = sld [smem:[#allocation27_spill]] }
  0x85   : > { %s1983_s4 = sld [smem:[#allocation26_spill]]  ;;  %s1942_s3 = smov 8  }
  0x86   : > { %s1984_s30 = sld [smem:[#allocation25_spill]]  ;;  %p1985_p12 = scmp.eq.s32.totalorder %s1599_s1, 0 }
  0x87   : > { %951 = dma.hbm_to_vmem [thread:$0]  (!%p1703_p8), %s245_s21, 256, %s247_s25, %s236_s16, %s1941_s9, %s1941_s9, %s1942_s3  }
  0x88   : > { %p1986_p13 = scmp.eq.s32.totalorder %s1420_s20, 0  ;;  %p1987_p9 = scmp.eq.s32.totalorder %s1612_s26, 0 }
  0x89   : > { %p1989_p5 = scmp.lt.s32.totalorder %s1420_s20, 6  ;;  %s1993_s9 = sld [smem:[#allocation37_spill]] }
  0x8a   : > { %s114_s5 = sadd.s32 1, %s1982_s6  ;;  %s277_s8 = sand.u32 1, %s1982_s6  }
  0x8b   : > { %p121_p4 = scmp.ne.s32.totalorder %s1982_s6, %s1983_s4  ;;  %s848_s7 = sshll.u32 %s277_s8, 7 }
  0x8c   : > { %s1720_s22 = scalar_select %p1985_p12, %s1982_s6, %s114_s5  }
  0x8d   : > { %p123_p6 = por %p121_p4, %p1986_p13  ;;  %p127_p0 = scmp.ne.s32.totalorder %s1983_s4, %s1984_s30 }
  0x8e   : > { %p1991_p8 = pmov %p1989_p5  ;;  %p1992_p12 = pmov %p1989_p5 }
  0x8f   : > { %p1729_p1 = por %p127_p0, %p1987_p9  ;;  %p1735_p10 = pnand %p1989_p5, %p123_p6 }
  0x90   : > { %s934_s21 = scalar_select %p123_p6, [#allocation4], [#allocation16] }
  0x91   : > { %s1988_s10 = scalar_select %p1729_p1, 1, 0 }
  0x92   : > { %s935_s1 = scalar_select %p123_p6, %s1416_s19, 0 }
  0x93   : > { %s2042_s21 = smov (!%p1991_p8, %s934_s21), [#allocation18]  ;;  %s279_s16 = scalar_lea.vmem [#allocation11], %s848_s7 }
  0x94   : > { %s2044_s1 = smov (!%p1992_p12, %s935_s1), 0  ;;  %s289_s6 = sshll.u32 %s279_s16, 4  ;;  %s1745_s6 = int_to_ptr.vmem [resolvable:$true] %s289_s6 }
  0x95   : > { %s280_s25 = sld [smem:[%s2042_s21 + %s2044_s1]]  ;;  %s1994_s3 = smov %s1993_s9 }
  0x96   : > { %p1236_p13 = pneg %p1735_p10  ;;  %s1239_s1 = scalar_lea.hbm %s1994_s3, 14336 }
  0x9b   : > { %s281_s4 = sadd.s32 %s1412_s18, %s280_s25 }
  0x9c   : > { %s897_s30 = sshll.u32 %s281_s4, 11 }
  0x9d   : > { %s1750_s27 = scalar_lea.hbm %s1993_s9, %s897_s30 }
  0x9e   : > { %s1234_s19 = scalar_lea.hbm %s1750_s27, 2048  ;;  %p1240_p9 = scmp.lt.s32.totalorder %s1750_s27, %s1994_s3 }
  0x9f   : > { %p1235_p4 = scmp.ne.s32.totalorder %s1750_s27, %s1234_s19  ;;  %p1241_p5 = scmp.lt.s32.totalorder %s1239_s1, %s1234_s19 }
  0xa1   : > { %p1237_p6 = pnand %p1236_p13, %p1235_p4  ;;  %p1242_p8 = por %p1241_p5, %p1240_p9 }
  0xa3   : > { %p1238_p0 = pneg %p1237_p6 }
  0xa5   : > { %p1243_p12 = pnand %p1242_p8, %p1238_p0 }
  0xa7   : > { %1246 = shalt.err (!%p1243_p12)
}
  0xa8   : > { %s1247_s9 = scalar_lea.vmem %s1745_s6, 2048  ;;  %s1431_s4 = smov [#allocation11]  }
  0xa9   : > { %p1248_p3 = scmp.ne.s32.totalorder %s1745_s6, %s1247_s9  ;;  %s1252_s30 = sshll.u32 %s1431_s4, 4  ;;  %s1253_s30 = int_to_ptr.vmem [resolvable:$false] %s1252_s30 }
  0xaa   : > { %s1254_s5 = scalar_lea.vmem %s1253_s30, 4096  ;;  %p1255_p6 = scmp.lt.s32.totalorder %s1745_s6, %s1253_s30 }
  0xab   : > { %p1250_p7 = pnand %p1248_p3, %p1236_p13  ;;  %p1256_p1 = scmp.lt.s32.totalorder %s1254_s5, %s1247_s9 }
  0xad   : > { %p1251_p4 = pneg %p1250_p7  ;;  %p1257_p2 = por %p1256_p1, %p1255_p6 }
  0xaf   : > { %p1258_p11 = pnand %p1257_p2, %p1251_p4 }
  0xb1   : > { %1261 = shalt.err (!%p1258_p11)
}
  0xb2   : > { %s1995_s19 = smov 8   ;;  %s1996_s8 = smov 128  }
  0xb3   : > { %961 = dma.hbm_to_vmem [thread:$0]  (!%p1735_p10), %s1750_s27, 2048, %s1745_s6, %s1641_s23, %s1996_s8, %s1996_s8, %s1995_s19  }
  0xb4   : > { %p1997_p7 = scmp.ne.s32.totalorder %s1965_s24, 0 }
  0xb5   : > { %s1777_s7 = sand.u32 (!%p1997_p7), 1, %s1396_s14   ;;  %p1998_p11 = scmp.ne.s32.totalorder (!%p1997_p7), %s1975_s17, 0 }
  0xb6   : > { %301 = sbr.rel (%p1997_p7) target bundleno = 749 (0x2ed), region = 40  ;;  %s853_s21 = sshll.u32 (!%p1997_p7), %s1777_s7, 4 }
  0xb7   : > { %s304_s1 = scalar_lea.sflag (!%p1997_p7), [#allocation7], %s1777_s7  ;;  %s1781_s25 = scalar_lea.vmem (!%p1997_p7), [#allocation6], %s853_s21 }
  0xbb   : > { %1347 = dma.done.wait (%p1998_p11), %s304_s1, 256  }
  0xbc   : > { %1349 = vsyncadd (%p1998_p11), %s304_s1, 4294967040  ;;  %s312_s2 = sand.u32 1, %s1612_s26   ;;  %s314_s24 = sand.u32 1, %s1384_s11  }
  0xbd   : > { %s313_s23 = scalar_lea.sflag [#allocation10], %s312_s2  ;;  %s1789_s27 = scalar_lea.vmem [#allocation9], %s314_s24 }
  0xbe   : > { %p1999_p2 = scmp.ne.s32.totalorder %s1964_s0, 0 }
  0xc0   : > { %1351 = dma.done.wait (%p1999_p2), %s313_s23, 16  }
  0xc1   : > { %1353 = vsyncadd (%p1999_p2), %s313_s23, 4294967280  ;;  %s2000_s6 = sld [smem:[#allocation26_spill]]  ;;  %p2001_p3 = scmp.ne.s32.totalorder %s1988_s10, 0 }
  0xc7   : > { %s322_s16 = sand.u32 1, %s2000_s6  }
  0xc8   : > { %s854_s9 = sshll.u32 %s322_s16, 7 }
  0xc9   : > { %s1796_s4 = scalar_lea.vmem [#allocation11], %s854_s9 }
  0xca   : > { %1355 = dma.done.wait (%p2001_p3), %s313_s23, 2048  }
  0xcb   : > { %1357 = vsyncadd (%p2001_p3), %s313_s23, 4294965248  ;;  %p2002_p1 = scmp.eq.s32.totalorder %s1612_s26, 0 }
  0xcd   : > { %1359 = dma.done.wait (%p2002_p1), [#allocation13], 1024   ;;  %p2003_p10 = pmov %p2002_p1 }
  0xce   : > { %s1806_s17 = scalar_lea.vmem [#allocation14], %s853_s21  ;;  %s2004_s0 = sld [smem:[#allocation28_spill]] }
  0xcf   : > { %1361 = vsyncadd (%p2003_p10), [#allocation13], 4294966272 }
  0xd4   : > { %p857_p13 = scmp.ne.s32.totalorder %s2004_s0, 0 }
  0xd6   : > { %375 = sbr.rel (%p857_p13) target bundleno = 222 (0xde), region = 60 }
  0xdb   : > { %v1432_v0 = vmov 0.0  }
  0xdc   : > { %376 = vst [vmem:[#allocation2 + $0x10] sm:$0xff] %v1432_v0  ;;  %377 = vst [vmem:[#allocation2] sm:$0xff] %v1432_v0 }
  0xdd   : > { %378 = vst [vmem:[#allocation2 + $0x18] sm:$0xff] %v1432_v0  ;;  %379 = vst [vmem:[#allocation2 + $0x8] sm:$0xff] %v1432_v0 }
  0xde PF: > { %s2005_s30 = sld [smem:[#allocation29_spill]] }
  0xdf   : > { %s2006_s5 = sld [smem:[#allocation28_spill]] }
  0xe4   : > { %s380_s10 = sld [smem:[#allocation5 + %s2005_s30]] }
  0xea   : > { %p858_p0 = scmp.ge.s32.totalorder %s2006_s5, %s380_s10 }
  0xeb   : > { %s2007_s26 = sld [smem:[#allocation29_spill]] (!%p858_p0) }
  0xec   : > { %384 = sbr.rel (%p858_p0) target bundleno = 476 (0x1dc), region = 64 }
  0xf1   : > { %v1096_v1 = vld [vmem:[%s1796_s4 + $0x74] ss:$8 sps:$4 sm:$0xff]   ;;  %v1098_v2 = vld [vmem:[%s1796_s4 + $0x70] ss:$8 sps:$4 sm:$0xff]   ;;  %v1433_v3 = vmov 0   ;;  %v389_v11 = vlaneseq  ;;  %s859_s19 = sshll.u32 %s2007_s26, 4 }
  0xf2   : > { %535 = vmatprep.mubr.bf16.mxu0 %v1433_v3  ;;  %503 = vmatprep.subr.bf16.mxu0 %v1096_v1  ;;  %v1099_v4 = vld [vmem:[%s1796_s4 + $0x64] ss:$8 sps:$4 sm:$0xff]   ;;  %v1101_v5 = vld [vmem:[%s1796_s4 + $0x60] ss:$8 sps:$4 sm:$0xff]   ;;  %v1102_v6 = vld [vmem:[%s1796_s4 + $0x54] ss:$8 sps:$4 sm:$0xff]   ;;  %v387_v16 = vstv %s859_s19 }
  0xf3   : > { %504 = vmatpush1.bf16.msra.mxu0 %v1098_v2  ;;  %v1104_v7 = vld [vmem:[%s1796_s4 + $0x50] ss:$8 sps:$4 sm:$0xff]   ;;  %v1105_v8 = vld [vmem:[%s1796_s4 + $0x44] ss:$8 sps:$4 sm:$0xff]   ;;  %v1107_v9 = vld [vmem:[%s1796_s4 + $0x40] ss:$8 sps:$4 sm:$0xff]  }
  0xf4   : > { %505 = vmatprep.subr.bf16.mxu0 %v1099_v4  ;;  %v1108_v10 = vld [vmem:[%s1796_s4 + $0x34] ss:$8 sps:$4 sm:$0xff]   ;;  %v1110_v12 = vld [vmem:[%s1796_s4 + $0x30] ss:$8 sps:$4 sm:$0xff]   ;;  %v1111_v13 = vld [vmem:[%s1796_s4 + $0x24] ss:$8 sps:$4 sm:$0xff]  }
  0xf5   : > { %v390_v14 = vshrl.u32 %v389_v11, 7  ;;  %v385_v15 = vld [vmem:[%s1789_s27] sm:$0x1]  ;;  %v1113_v17 = vld [vmem:[%s1796_s4 + $0x20] ss:$8 sps:$4 sm:$0xff]   ;;  %v403_v27 = vld [vmem:[#allocation2 + $0x10] sm:$0xff] }
  0xf6   : > { %v1114_v18 = vld [vmem:[%s1796_s4 + $0x14] ss:$8 sps:$4 sm:$0xff]   ;;  %v388_v19 = vsub.s32 %v385_v15, %v387_v16  ;;  %v1116_v21 = vld [vmem:[%s1796_s4 + $0x10] ss:$8 sps:$4 sm:$0xff]   ;;  %v1117_v22 = vld [vmem:[%s1796_s4 + $0x4] ss:$8 sps:$4 sm:$0xff]  }
  0xf7   : > { %506 = vmatpush1.bf16.msra.mxu0 %v1101_v5  ;;  %v394_v20 = vsub.s32 0, %v390_v14  ;;  %v391_v23 = vadd.s32 8, %v390_v14  ;;  %v1119_v25 = vld [vmem:[%s1796_s4] ss:$8 sps:$4 sm:$0xff]   ;;  %v1434_v26 = vmov 1.0|1.0  }
  0xf8   : > { %507 = vmatprep.subr.bf16.mxu0 %v1102_v6  ;;  %v404_v29 = vld [vmem:[#allocation2] sm:$0xff]  ;;  %v405_v32 = vld [vmem:[#allocation2 + $0x18] sm:$0xff]  ;;  %v406_v35 = vld [vmem:[#allocation2 + $0x8] sm:$0xff] }
  0xf9   : > { %v395_v24 = vrot.slane %v388_v19, %v394_v20 }
  0xfb   : > { %508 = vmatpush1.bf16.msra.mxu0 %v1104_v7  ;;  %vm396_vm0 = vcmp.eq.s32.totalorder %v390_v14, %v395_v24  ;;  %vm397_vm1 = vcmp.eq.s32.totalorder %v391_v23, %v395_v24 }
  0xfc   : > { %509 = vmatprep.subr.bf16.mxu0 %v1105_v8  ;;  %vm878_vm2 = vmpackc.low %vm397_vm1, %vm396_vm0 }
  0xff   : > { %510 = vmatpush1.bf16.msra.mxu0 %v1107_v9 }
 0x100   : > { %511 = vmatprep.subr.bf16.mxu0 %v1108_v10 }
 0x103   : > { %512 = vmatpush1.bf16.msra.mxu0 %v1110_v12 }
 0x104   : > { %513 = vmatprep.subr.bf16.mxu0 %v1111_v13 }
 0x107   : > { %514 = vmatpush1.bf16.msra.mxu0 %v1113_v17 }
 0x108   : > { %515 = vmatprep.subr.bf16.mxu0 %v1114_v18 }
 0x10b   : > { %516 = vmatpush1.bf16.msra.mxu0 %v1116_v21 }
 0x10c   : > { %517 = vmatprep.subr.bf16.mxu0 %v1117_v22 }
 0x10f   : > { %518 = vmatpush1.bf16.msra.mxu0 %v1119_v25 }
 0x112   : > { %879 = vmatmul.mubr.msk.bf16.vlgmr.msra.gmra.mxu0 %vm878_vm2, %v1434_v26 }
 0x1d2   : > { %v537_v28 = vpop.f32.mrf.mxu0 }
 0x1d3   : > { %v546_v30 = vadd.f32 %v537_v28, %v403_v27 }
 0x1d4   : > { %v539_v31 = vpop.f32.mrf.mxu0 }
 0x1d5   : > { %550 = vst [vmem:[#allocation2 + $0x10] sm:$0xff] %v546_v30  ;;  %v547_v33 = vadd.f32 %v539_v31, %v404_v29 }
 0x1d6   : > { %v541_v34 = vpop.f32.mrf.mxu0 }
 0x1d7   : > { %551 = vst [vmem:[#allocation2] sm:$0xff] %v547_v33  ;;  %v548_v36 = vadd.f32 %v541_v34, %v405_v32 }
 0x1d8   : > { %v543_v37 = vpop.f32.mrf.mxu0 }
 0x1d9   : > { %552 = vst [vmem:[#allocation2 + $0x18] sm:$0xff] %v548_v36  ;;  %v549_v38 = vadd.f32 %v543_v37, %v406_v35 }
 0x1db   : > { %553 = vst [vmem:[#allocation2 + $0x8] sm:$0xff] %v549_v38 }
 0x1dc PF: > { %s2008_s8 = sld [smem:[#allocation28_spill]] }
 0x1e2   : > { %p880_p9 = scmp.ne.s32.totalorder %s2008_s8, 1 }
 0x1e3   : > { %s2009_s2 = sld [smem:[#allocation39_spill]] (!%p880_p9) }
 0x1e4   : > { %557 = sbr.rel (%p880_p9) target bundleno = 722 (0x2d2), region = 68 }
 0x1e9   : > { %v1120_v39 = vld [vmem:[#allocation12 + $0x38] sm:$0xff]   ;;  %v1435_v40 = vmov 0.0   ;;  %v1121_v41 = vld [vmem:[#allocation12 + $0x30] sm:$0xff]   ;;  %vm1436_vm3 = vmmov 0   ;;  %v1122_v42 = vld [vmem:[#allocation12 + $0x28] sm:$0xff]  }
 0x1ea   : > { %908 = vmatprep.subr.bf16.mxu0 %v1435_v40  ;;  %924 = vmatprep.mubr.msk.bf16.mxu0 %vm1436_vm3, %v1435_v40  ;;  %v558_v43 = vld [vmem:[#allocation2 + $0x10] sm:$0xff]  ;;  %v560_v44 = vld [vmem:[#allocation2 + $0x18] sm:$0xff]  ;;  %v1123_v45 = vld [vmem:[#allocation12 + $0x20] sm:$0xff]  }
 0x1eb   : > { %909 = vmatpush3.bf16.msra.mxu0 %v1120_v39  ;;  %1128 = vrcp.f32 %v558_v43  ;;  %v1124_v46 = vld [vmem:[#allocation12 + $0x18] sm:$0xff]   ;;  %v1125_v47 = vld [vmem:[#allocation12 + $0x10] sm:$0xff]   ;;  %v561_v49 = vld [vmem:[#allocation2 + $0x8] sm:$0xff]  ;;  %vm562_vm4 = vcmp.gt.f32.partialorder %v558_v43, 0.0  ;;  %vm563_vm5 = vcmp.gt.f32.partialorder %v560_v44, 0.0 }
 0x1ec   : > { %910 = vmatprep.subr.bf16.mxu0 %v1435_v40  ;;  %1130 = vrcp.f32 %v560_v44  ;;  %v559_v48 = vld [vmem:[#allocation2] sm:$0xff]  ;;  %v1126_v51 = vld [vmem:[#allocation12 + $0x8] sm:$0xff]  }
 0x1ed   : > { %v570_v54 = vld [vmem:[%s1781_s25] sm:$0xff]  ;;  %v571_v56 = vld [vmem:[%s1781_s25 + $0x8] sm:$0xff] }
 0x1ee   : > { %v1127_v58 = vld [vmem:[#allocation12] sm:$0xff]   ;;  %v881_v63 = vld [vmem:[%s2009_s2] ss:$0 sm:$0xff] }
 0x1ef   : > { %911 = vmatpush3.bf16.msra.mxu0 %v1121_v41 }
 0x1f0   : > { %912 = vmatprep.subr.bf16.mxu0 %v1435_v40 }
 0x1f3   : > { %913 = vmatpush3.bf16.msra.mxu0 %v1122_v42 }
 0x1f4   : > { %914 = vmatprep.subr.bf16.mxu0 %v1435_v40 }
 0x1f7   : > { %915 = vmatpush3.bf16.msra.mxu0 %v1123_v45 }
 0x1f8   : > { %916 = vmatprep.subr.bf16.mxu0 %v1435_v40  ;;  %v1129_v50 = vpop.eup %1128 }
 0x1f9   : > { %v1131_v52 = vpop.eup %1130  ;;  %v566_v53 = vmul.f32 %v1129_v50, %v559_v48 }
 0x1fa   : > { %v567_v55 = vmul.f32 %v1131_v52, %v561_v49 }
 0x1fb   : > { %917 = vmatpush3.bf16.msra.mxu0 %v1124_v46  ;;  %v568_v57 = vsel %vm562_vm4, %v566_v53, 0.0 }
 0x1fc   : > { %918 = vmatprep.subr.bf16.mxu0 %v1435_v40  ;;  %v569_v59 = vsel %vm563_vm5, %v567_v55, 0.0  ;;  %v572_v60 = vadd.f32 %v570_v54, %v568_v57 }
 0x1fd   : > { %v573_v61 = vadd.f32 %v571_v56, %v569_v59 }
 0x1ff   : > { %919 = vmatpush3.bf16.msra.mxu0 %v1125_v47  ;;  %v574_v62 = vpack.c.bf16 %v573_v61, %v572_v60 }
 0x200   : > { %920 = vmatprep.subr.bf16.mxu0 %v1435_v40 }
 0x203   : > { %921 = vmatpush3.bf16.msra.mxu0 %v1126_v51 }
 0x204   : > { %922 = vmatprep.subr.bf16.mxu0 %v1435_v40 }
 0x207   : > { %923 = vmatpush3.bf16.msra.mxu0 %v1127_v58 }
 0x20a   : > { %925 = vmatmul.mubr.bf16.vlgmr.msra.gmra.mxu0 %v574_v62 }
 0x2ca   : > { %v680_v0 = vpop.f32.mrf.mxu0 }
 0x2cb   : > { %v681_v1 = vadd.f32 %v881_v63, %v680_v0 }
 0x2cc   : > { %v926_v2 = vpop.f32.mrf.mxu0 }
 0x2cd   : > { %687 = vst [vmem:[%s1806_s17] sm:$0xff] %v681_v1 }
 0x2ce   : > { %v683_v3 = vpop.f32.mrf.mxu0 }
 0x2cf   : > { %v684_v4 = vadd.f32 %v881_v63, %v683_v3 }
 0x2d0   : > { %v927_v5 = vpop.f32.mrf.mxu0 }
 0x2d1   : > { %688 = vst [vmem:[%s1806_s17 + $0x8] sm:$0xff] %v684_v4 }
 0x2d2 PF: > { %s2010_s25 = sld [smem:[#allocation29_spill]]  ;;  %s703_s9 = sshll.u32 %s1806_s17, 4  ;;  %s1844_s9 = int_to_ptr.vmem [resolvable:$true] %s703_s9 }
 0x2d3   : > { %s2011_s6 = sld [smem:[#allocation40_spill]]  ;;  %s690_s4 = scalar_lea.sflag [#allocation8], %s1777_s7 }
 0x2d4   : > { %s1262_s0 = scalar_lea.vmem %s1844_s9, 256  ;;  %p2012_p8 = scmp.ne.s32.totalorder %s1977_s28, 0 }
 0x2d5   : > { %p1263_p5 = scmp.ne.s32.totalorder %s1844_s9, %s1262_s0  ;;  %s1437_s30 = smov [#allocation14]  }
 0x2d6   : > { %s1266_s10 = sshll.u32 %s1437_s30, 4  ;;  %s1267_s10 = int_to_ptr.vmem [resolvable:$false] %s1266_s10 }
 0x2d7   : > { %p1264_p12 = pnand %p1263_p5, %p2012_p8  ;;  %s1268_s5 = scalar_lea.vmem %s1267_s10, 512 }
 0x2d8   : > { %s898_s24 = sshll.u32 %s2010_s25, 8  ;;  %p1269_p6 = scmp.lt.s32.totalorder %s1844_s9, %s1267_s10 }
 0x2d9   : > { %s1841_s16 = scalar_lea.hbm %s2011_s6, %s898_s24  ;;  %p1265_p4 = pneg %p1264_p12 }
 0x2da   : > { %p1270_p7 = scmp.lt.s32.totalorder %s1268_s5, %s1262_s0 }
 0x2dc   : > { %p1271_p11 = por %p1270_p7, %p1269_p6 }
 0x2de   : > { %p1272_p2 = pnand %p1271_p11, %p1265_p4 }
 0x2e0   : > { %1275 = shalt.err (!%p1272_p2)
}
 0x2e1   : > { %s1276_s17 = scalar_lea.hbm %s1841_s16, 256  ;;  %s1280_s8 = scalar_lea.hbm %s2011_s6, 768 }
 0x2e2   : > { %p1277_p3 = scmp.ne.s32.totalorder %s1841_s16, %s1276_s17  ;;  %p1281_p13 = scmp.lt.s32.totalorder %s1841_s16, %s2011_s6 }
 0x2e3   : > { %p1282_p0 = scmp.lt.s32.totalorder %s1280_s8, %s1276_s17 }
 0x2e4   : > { %p1278_p1 = pnand %p1277_p3, %p2012_p8 }
 0x2e5   : > { %p1283_p9 = por %p1282_p0, %p1281_p13 }
 0x2e6   : > { %p1279_p10 = pneg %p1278_p1 }
 0x2e8   : > { %p1284_p5 = pnand %p1283_p9, %p1279_p10 }
 0x2ea   : > { %1287 = shalt.err (!%p1284_p5)
}
 0x2eb   : > { %s1438_s2 = smov 128   ;;  %s1439_s25 = smov 8  }
 0x2ec   : > { %942 = dma.vmem_to_hbm [thread:$0]  (%p2012_p8), %s1844_s9, 256, %s1841_s16, %s690_s4, %s1438_s2, %s1438_s2, %s1439_s25  }
 0x2ed PF: > { %p969_p12 = scmp.ge.s32.totalorder %s1420_s20, 2  ;;  %s718_s24 = sand.u32 1, %s1392_s13  }
 0x2ee   : > { %p2013_p4 = scmp.ne.s32.totalorder %s1978_s29, 0  ;;  %s719_s23 = scalar_lea.sflag [#allocation8], %s718_s24 }
 0x2f0   : > { %p963_p6 = pnand %p969_p12, %p2013_p4 }
 0x2f2   : > { %p964_p7 = pneg %p963_p6 }
 0x2f4   : > { %1363 = dma.done.wait (%p964_p7), %s719_s23, 256  }
 0x2f5   : > { %1365 = vsyncadd (%p964_p7), %s719_s23, 4294967040  ;;  %s35_s20 = sadd.s32 1, %s1420_s20   ;;  %s2015_s0 = sld [smem:[#allocation26_spill]] }
 0x2f6   : > { %p1874_p11 = scmp.ge.s32.totalorder %s35_s20, 8   ;;  %s2016_s1 = sld [smem:[#allocation27_spill]] }
 0x2f7   : > { %s2017_s28 = sld [smem:[#allocation33_spill]]  ;;  %s2022_s9 = smov %s1720_s22 }
 0x2f8   : > { %s2018_s29 = sld [smem:[#allocation34_spill]]  ;;  %s2023_s10 = smov %s1384_s11 }
 0x2f9   : > { %s2019_s17 = sld [smem:[#allocation30_spill]]  ;;  %s2024_s11 = smov %s1388_s12 }
 0x2fa   : > { %s2020_s7 = sld [smem:[#allocation31_spill]]  ;;  %s2026_s13 = smov %s1396_s14 }
 0x2fb   : > { %s2021_s19 = sld [smem:[#allocation32_spill]]  ;;  %s2027_s14 = smov %s1400_s15 }
 0x2fc   : > { %s2029_s16 = smov %s1412_s18  ;;  %34 = sbr.rel (!%p1874_p11) target bundleno = 31 (0x1f), region = 125 }
 0x2fd   : > { %s2025_s12 = smov %s2017_s28 }
 0x2fe   : > { %s2028_s15 = smov %s2018_s29 }
 0x300   : > { %s2030_s18 = smov %s2020_s7 }
 0x301   :  { %724 = vsyncpa [#allocation7], 1 }
 0x302   :  { %726 = vsyncpa [#allocation7 + $0x1], 1 }
 0x303   :  { %727 = vsyncpa [#allocation10], 1 }
 0x304   :  { %729 = vsyncpa [#allocation10 + $0x1], 1 }
 0x305   :  { %730 = vsyncpa [#allocation13], 1 }
 0x306   :  { %731 = vsyncpa [#allocation8], 1 }
 0x307   :  { %733 = vsyncpa [#allocation8 + $0x1], 1 }

</bundles_post_ra>
